<compile_context>
chip_gen: v7x
topology: tpu7x:2x2x1
jax: 0.10.0
libtpu: 0.0.40
codegen_flags: <defaults>
</compile_context>

<pallas_src>
import functools

import jax
import jax.numpy as jnp
from jax import lax
from jax.experimental import pallas as pl
from jax.experimental.pallas import tpu as pltpu


def _round_up(v, m):
    return (v + m - 1) // m * m


def _contrastive_kernel(x_ref, lab_ref, out_ref, *, margin, num_classes):
    n = x_ref.shape[0]
    c1 = num_classes + 1
    out_cols = out_ref.shape[1]

    lab_row = lab_ref[...]                                    # (1, N) int32

    # Column-oriented labels without a transpose: mask the diagonal of the
    # broadcast (N, N) label matrix and reduce along lanes (VPU + XLU only).
    ri = lax.broadcasted_iota(jnp.int32, (n, n), 0)
    ci = lax.broadcasted_iota(jnp.int32, (n, n), 1)
    lab_col = jnp.sum(jnp.where(ri == ci, lab_row, 0),
                      axis=1, keepdims=True)                  # (N, 1) int32

    # --- cosine distance via pre-normalized rows ------------------------------
    x = x_ref[...].astype(jnp.float32)                        # (N, D)
    sq = jnp.sum(x * x, axis=1, keepdims=True)                # (N, 1)
    x_n = (x * lax.rsqrt(sq)).astype(jnp.bfloat16)            # unit rows, bf16 MXU operands
    gram = lax.dot_general(x_n, x_n, (((1,), (1,)), ((), ())),
                           preferred_element_type=jnp.float32)    # (N, N) f32
    cos_dist = 1.0 - gram

    # distance_matrix[i, j] = sign(|labels[j] - labels[i]|) == (labels differ)
    dm = (lab_row != lab_col).astype(jnp.float32)             # (N, N)

    # positive loss (same-class pairs), normalized by pair count if nonzero
    pos_mask = 1.0 - dm
    pos_num = jnp.sum(pos_mask * cos_dist, keepdims=True)     # (1, 1)
    pos_den = jnp.sum(pos_mask, keepdims=True)
    pos_sum = jnp.where(pos_den != 0.0, pos_num / pos_den, pos_num)

    # negative loss (different-class pairs)
    delta = jnp.maximum(margin - cos_dist, 0.0)
    neg_num = jnp.sum(dm * delta, keepdims=True)
    neg_den = jnp.sum(dm, keepdims=True)
    neg_sum = jnp.where(neg_den != 0.0, neg_num / neg_den, neg_num)

    # --- per-class-pair aggregation -------------------------------------------
    # agg[i, j] = mean of cos_dist[labels==i][:, labels==j]
    # One-hot matrices in both orientations via broadcast compares (no
    # transposes / extra matmuls). The "wide" one-hot is lane-padded to the
    # output width so the result is stored lane-dense.
    cls_r = lax.broadcasted_iota(jnp.int32, (c1, n), 0)
    onehot_t = (lab_row == cls_r).astype(jnp.float32)         # (C1, N)
    cls_w = lax.broadcasted_iota(jnp.int32, (n, out_cols), 1)
    onehot_w = (lab_col == cls_w).astype(jnp.float32)         # (N, Cpad)

    tmp = lax.dot_general(cos_dist.astype(jnp.bfloat16),
                          onehot_w.astype(jnp.bfloat16),
                          (((1,), (0,)), ((), ())),
                          preferred_element_type=jnp.float32)       # (N, Cpad)
    agg_num = lax.dot_general(onehot_t.astype(jnp.bfloat16),
                              tmp.astype(jnp.bfloat16),
                              (((1,), (0,)), ((), ())),
                              preferred_element_type=jnp.float32)   # (C1, Cpad)
    counts_col = jnp.sum(onehot_t, axis=1, keepdims=True)     # (C1, 1)
    counts_row = jnp.sum(onehot_w, axis=0, keepdims=True)     # (1, Cpad)
    agg_den = counts_col * counts_row                         # VPU outer product
    # keep the 0/0 division: empty class pairs -> NaN (torch mean of empty slice)
    agg_wide = agg_num / agg_den                              # (C1, Cpad)

    # --- pack everything into the single lane-dense output block --------------
    col_w = lax.broadcasted_iota(jnp.int32, (1, out_cols), 1)
    row0 = (jnp.where(col_w == 0, pos_sum, 0.0)
            + jnp.where(col_w == 1, neg_sum, 0.0))            # (1, Cpad)
    out_ref[...] = jnp.zeros_like(out_ref)
    out_ref[0:1, :] = row0
    out_ref[1:1 + c1, :] = agg_wide


def contrastive_loss(img_enc, labels, *, num_classes=5, margin=1.0):
    """Returns (positive_loss_sum, negative_loss_sum, agg_loss)."""
    n, _ = img_enc.shape
    c1 = num_classes + 1
    if n > 1024:
        # TODO(synk): tile over a (qi, kj) grid for large N (see header note).
        raise NotImplementedError("single-block kernel; tile for N > 1024")

    rows = max(8, _round_up(1 + c1, 8))
    cols = max(128, _round_up(c1, 128))
    lab_row = labels.astype(jnp.int32).reshape(1, n)

    kernel = functools.partial(_contrastive_kernel,
                               margin=float(margin),
                               num_classes=int(num_classes))

    # NOTE: if this loss were evaluated over a leading batch axis, add
    # grid=(B,) + dimension_semantics=("parallel",) instead of B separate
    # calls (shards across v7x's two TensorCores, amortizes launch overhead).
    packed = pl.pallas_call(
        kernel,
        out_shape=jax.ShapeDtypeStruct((rows, cols), jnp.float32),
        in_specs=[pl.BlockSpec(memory_space=pltpu.MemorySpace.VMEM)] * 2,
        out_specs=pl.BlockSpec(memory_space=pltpu.MemorySpace.VMEM),
    )(img_enc, lab_row)

    return packed[0, 0], packed[0, 1], packed[1:1 + c1, 0:c1]


def _reference(img_enc, labels, *, num_classes=5, margin=1.0):
    """Pure-JAX reference mirroring the PyTorch forward."""
    x = img_enc.astype(jnp.float32)
    w = jnp.sqrt(jnp.sum(x * x, axis=1, keepdims=True))
    cos = 1.0 - (x @ x.T) / (w * w.T)
    lab = labels.astype(jnp.float32)
    dm = jnp.sign(jnp.abs(lab[None, :] - lab[:, None]))
    pos = (1.0 - dm) * cos
    pos = jnp.where((1.0 - dm).sum() != 0, pos / (1.0 - dm).sum(), pos)
    delta = jnp.maximum(margin - cos, 0.0)
    neg = dm * delta
    neg = jnp.where(dm.sum() != 0, neg / dm.sum(), neg)
    c1 = num_classes + 1
    oh = (lab[:, None] == jnp.arange(c1, dtype=jnp.float32)[None, :]).astype(jnp.float32)
    agg = (oh.T @ cos @ oh) / (oh.sum(0)[:, None] * oh.sum(0)[None, :])
    return pos.sum(), neg.sum(), agg


if __name__ == "__main__":
    num_classes = 5
    margin = 1.0
    N, D = 8, 32

    key = jax.random.PRNGKey(0)
    kx, kl = jax.random.split(key)
    img_enc = jax.random.normal(kx, (N, D), dtype=jnp.float32)
    labels = jax.random.randint(kl, (N,), 0, num_classes + 1, dtype=jnp.int32)

    pos, neg, agg = contrastive_loss(img_enc, labels,
                                     num_classes=num_classes, margin=margin)
    jax.block_until_ready((pos, neg, agg))

    rpos, rneg, ragg = _reference(img_enc, labels,
                                  num_classes=num_classes, margin=margin)
    # Tolerance accounts for bf16 MXU operands (matches TPU-native matmul precision).
    assert jnp.allclose(pos, rpos, atol=2e-2, rtol=2e-2)
    assert jnp.allclose(neg, rneg, atol=2e-2, rtol=2e-2)
    assert jnp.allclose(agg, ragg, atol=2e-2, rtol=2e-2, equal_nan=True)

    print("KERNEL_OK")
</pallas_src>

<mosaic_0001>
module attributes {stable_mosaic.version = 11 : i64} {
  func.func @_contrastive_kernel(%arg0: memref<8x32xf32, #tpu.memory_space<vmem>>, %arg1: memref<1x8xi32, #tpu.memory_space<vmem>>, %arg2: memref<8x128xf32, #tpu.memory_space<vmem>>) attributes {dimension_semantics = [], scalar_prefetch = 0 : i64, scratch_operands = 0 : i64, tpu.core_type = #tpu.core_type<tc>} {
    %c0 = arith.constant 0 : index
    %c0_0 = arith.constant 0 : index
    %0 = vector.load %arg1[%c0, %c0_0] : memref<1x8xi32, #tpu.memory_space<vmem>>, vector<1x8xi32>
    %1 = tpu.iota {dimensions = array<i32: 0>} : vector<8x8xi32>
    %2 = tpu.iota {dimensions = array<i32: 1>} : vector<8x8xi32>
    %3 = arith.cmpi eq, %1, %2 : vector<8x8xi32>
    %c0_i32 = arith.constant 0 : i32
    %4 = vector.shape_cast %0 : vector<1x8xi32> to vector<1x8xi32>
    %5 = vector.broadcast %4 : vector<1x8xi32> to vector<8x8xi32>
    %6 = vector.broadcast %c0_i32 : i32 to vector<8x8xi32>
    %7 = arith.select %3, %5, %6 : vector<8x8xi1>, vector<8x8xi32>
    %cst = arith.constant dense<0> : vector<8xi32>
    %8 = vector.multi_reduction <add>, %7, %cst [1] : vector<8x8xi32> to vector<8xi32>
    %9 = vector.shape_cast %8 : vector<8xi32> to vector<8x1xi32>
    %c0_1 = arith.constant 0 : index
    %c0_2 = arith.constant 0 : index
    %10 = vector.load %arg0[%c0_1, %c0_2] : memref<8x32xf32, #tpu.memory_space<vmem>>, vector<8x32xf32>
    %11 = arith.mulf %10, %10 : vector<8x32xf32>
    %cst_3 = arith.constant dense<0.000000e+00> : vector<8xf32>
    %12 = vector.multi_reduction <add>, %11, %cst_3 [1] : vector<8x32xf32> to vector<8xf32>
    %13 = vector.shape_cast %12 : vector<8xf32> to vector<8x1xf32>
    %14 = math.rsqrt %13 : vector<8x1xf32>
    %15 = vector.broadcast %14 : vector<8x1xf32> to vector<8x32xf32>
    %16 = arith.mulf %10, %15 : vector<8x32xf32>
    %17 = arith.truncf %16 : vector<8x32xf32> to vector<8x32xbf16>
    %cst_4 = arith.constant dense<0.000000e+00> : vector<8x8xf32>
    %18 = tpu.matmul %17, %17, %cst_4 {dimension_numbers = #tpu.dot_dimension_numbers<[1], [1], [0], [0], [0, 0, 1, 0], [], []>} : vector<8x32xbf16>, vector<8x32xbf16>, vector<8x8xf32> -> vector<8x8xf32>
    %cst_5 = arith.constant 1.000000e+00 : f32
    %19 = vector.broadcast %cst_5 : f32 to vector<8x8xf32>
    %20 = arith.subf %19, %18 : vector<8x8xf32>
    %21 = vector.broadcast %0 : vector<1x8xi32> to vector<8x8xi32>
    %22 = vector.broadcast %9 : vector<8x1xi32> to vector<8x8xi32>
    %23 = arith.cmpi ne, %21, %22 : vector<8x8xi32>
    %24 = arith.extui %23 : vector<8x8xi1> to vector<8x8xi32>
    %25 = arith.sitofp %24 : vector<8x8xi32> to vector<8x8xf32>
    %cst_6 = arith.constant 1.000000e+00 : f32
    %26 = vector.broadcast %cst_6 : f32 to vector<8x8xf32>
    %27 = arith.subf %26, %25 : vector<8x8xf32>
    %28 = arith.mulf %27, %20 : vector<8x8xf32>
    %29 = vector.shape_cast %28 : vector<8x8xf32> to vector<1x8x8xf32>
    %cst_7 = arith.constant dense<0.000000e+00> : vector<1xf32>
    %30 = vector.multi_reduction <add>, %29, %cst_7 [1, 2] : vector<1x8x8xf32> to vector<1xf32>
    %31 = vector.shape_cast %30 : vector<1xf32> to vector<1x1x1xf32>
    %32 = vector.extract %31[0, 0, 0] : f32 from vector<1x1x1xf32>
    %33 = vector.broadcast %32 : f32 to vector<1x1xf32>
    %34 = vector.shape_cast %27 : vector<8x8xf32> to vector<1x8x8xf32>
    %cst_8 = arith.constant dense<0.000000e+00> : vector<1xf32>
    %35 = vector.multi_reduction <add>, %34, %cst_8 [1, 2] : vector<1x8x8xf32> to vector<1xf32>
    %36 = vector.shape_cast %35 : vector<1xf32> to vector<1x1x1xf32>
    %37 = vector.extract %36[0, 0, 0] : f32 from vector<1x1x1xf32>
    %38 = vector.broadcast %37 : f32 to vector<1x1xf32>
    %cst_9 = arith.constant 0.000000e+00 : f32
    %39 = vector.broadcast %cst_9 : f32 to vector<1x1xf32>
    %40 = arith.cmpf one, %38, %39 : vector<1x1xf32>
    %41 = arith.divf %33, %38 : vector<1x1xf32>
    %42 = arith.select %40, %41, %33 : vector<1x1xi1>, vector<1x1xf32>
    %cst_10 = arith.constant 1.000000e+00 : f32
    %43 = vector.broadcast %cst_10 : f32 to vector<8x8xf32>
    %44 = arith.subf %43, %20 : vector<8x8xf32>
    %cst_11 = arith.constant 0.000000e+00 : f32
    %45 = vector.broadcast %cst_11 : f32 to vector<8x8xf32>
    %46 = arith.maximumf %44, %45 : vector<8x8xf32>
    %47 = arith.mulf %25, %46 : vector<8x8xf32>
    %48 = vector.shape_cast %47 : vector<8x8xf32> to vector<1x8x8xf32>
    %cst_12 = arith.constant dense<0.000000e+00> : vector<1xf32>
    %49 = vector.multi_reduction <add>, %48, %cst_12 [1, 2] : vector<1x8x8xf32> to vector<1xf32>
    %50 = vector.shape_cast %49 : vector<1xf32> to vector<1x1x1xf32>
    %51 = vector.extract %50[0, 0, 0] : f32 from vector<1x1x1xf32>
    %52 = vector.broadcast %51 : f32 to vector<1x1xf32>
    %53 = vector.shape_cast %25 : vector<8x8xf32> to vector<1x8x8xf32>
    %cst_13 = arith.constant dense<0.000000e+00> : vector<1xf32>
    %54 = vector.multi_reduction <add>, %53, %cst_13 [1, 2] : vector<1x8x8xf32> to vector<1xf32>
    %55 = vector.shape_cast %54 : vector<1xf32> to vector<1x1x1xf32>
    %56 = vector.extract %55[0, 0, 0] : f32 from vector<1x1x1xf32>
    %57 = vector.broadcast %56 : f32 to vector<1x1xf32>
    %cst_14 = arith.constant 0.000000e+00 : f32
    %58 = vector.broadcast %cst_14 : f32 to vector<1x1xf32>
    %59 = arith.cmpf one, %57, %58 : vector<1x1xf32>
    %60 = arith.divf %52, %57 : vector<1x1xf32>
    %61 = arith.select %59, %60, %52 : vector<1x1xi1>, vector<1x1xf32>
    %62 = tpu.iota {dimensions = array<i32: 0>} : vector<6x8xi32>
    %63 = vector.broadcast %0 : vector<1x8xi32> to vector<6x8xi32>
    %64 = arith.cmpi eq, %63, %62 : vector<6x8xi32>
    %65 = arith.extui %64 : vector<6x8xi1> to vector<6x8xi32>
    %66 = arith.sitofp %65 : vector<6x8xi32> to vector<6x8xf32>
    %67 = tpu.iota {dimensions = array<i32: 1>} : vector<8x128xi32>
    %68 = vector.broadcast %9 : vector<8x1xi32> to vector<8x128xi32>
    %69 = arith.cmpi eq, %68, %67 : vector<8x128xi32>
    %70 = arith.extui %69 : vector<8x128xi1> to vector<8x128xi32>
    %71 = arith.sitofp %70 : vector<8x128xi32> to vector<8x128xf32>
    %72 = arith.truncf %20 : vector<8x8xf32> to vector<8x8xbf16>
    %73 = arith.truncf %71 : vector<8x128xf32> to vector<8x128xbf16>
    %cst_15 = arith.constant dense<0.000000e+00> : vector<8x128xf32>
    %74 = tpu.matmul %72, %73, %cst_15 {dimension_numbers = #tpu.dot_dimension_numbers<[1], [0], [0], [1], [0, 0, 1, 1], [], []>} : vector<8x8xbf16>, vector<8x128xbf16>, vector<8x128xf32> -> vector<8x128xf32>
    %75 = arith.truncf %66 : vector<6x8xf32> to vector<6x8xbf16>
    %76 = arith.truncf %74 : vector<8x128xf32> to vector<8x128xbf16>
    %cst_16 = arith.constant dense<0.000000e+00> : vector<6x128xf32>
    %77 = tpu.matmul %75, %76, %cst_16 {dimension_numbers = #tpu.dot_dimension_numbers<[1], [0], [0], [1], [0, 0, 1, 1], [], []>} : vector<6x8xbf16>, vector<8x128xbf16>, vector<6x128xf32> -> vector<6x128xf32>
    %cst_17 = arith.constant dense<0.000000e+00> : vector<6xf32>
    %78 = vector.multi_reduction <add>, %66, %cst_17 [1] : vector<6x8xf32> to vector<6xf32>
    %79 = vector.shape_cast %78 : vector<6xf32> to vector<6x1xf32>
    %cst_18 = arith.constant dense<0.000000e+00> : vector<128xf32>
    %80 = vector.multi_reduction <add>, %71, %cst_18 [0] : vector<8x128xf32> to vector<128xf32>
    %81 = vector.shape_cast %80 : vector<128xf32> to vector<1x128xf32>
    %82 = vector.broadcast %79 : vector<6x1xf32> to vector<6x128xf32>
    %83 = vector.broadcast %81 : vector<1x128xf32> to vector<6x128xf32>
    %84 = arith.mulf %82, %83 : vector<6x128xf32>
    %85 = arith.divf %77, %84 : vector<6x128xf32>
    %86 = tpu.iota {dimensions = array<i32: 1>} : vector<1x128xi32>
    %c0_i32_19 = arith.constant 0 : i32
    %87 = vector.broadcast %c0_i32_19 : i32 to vector<1x128xi32>
    %88 = arith.cmpi eq, %86, %87 : vector<1x128xi32>
    %cst_20 = arith.constant 0.000000e+00 : f32
    %89 = vector.shape_cast %42 : vector<1x1xf32> to vector<1x1xf32>
    %90 = vector.broadcast %89 : vector<1x1xf32> to vector<1x128xf32>
    %91 = vector.broadcast %cst_20 : f32 to vector<1x128xf32>
    %92 = arith.select %88, %90, %91 : vector<1x128xi1>, vector<1x128xf32>
    %c1_i32 = arith.constant 1 : i32
    %93 = vector.broadcast %c1_i32 : i32 to vector<1x128xi32>
    %94 = arith.cmpi eq, %86, %93 : vector<1x128xi32>
    %cst_21 = arith.constant 0.000000e+00 : f32
    %95 = vector.shape_cast %61 : vector<1x1xf32> to vector<1x1xf32>
    %96 = vector.broadcast %95 : vector<1x1xf32> to vector<1x128xf32>
    %97 = vector.broadcast %cst_21 : f32 to vector<1x128xf32>
    %98 = arith.select %94, %96, %97 : vector<1x128xi1>, vector<1x128xf32>
    %99 = arith.addf %92, %98 : vector<1x128xf32>
    %cst_22 = arith.constant 0.000000e+00 : f32
    %100 = vector.broadcast %cst_22 : f32 to vector<8x128xf32>
    %c0_23 = arith.constant 0 : index
    %c0_24 = arith.constant 0 : index
    %101 = vector.load %arg2[%c0_23, %c0_24] : memref<8x128xf32, #tpu.memory_space<vmem>>, vector<8x128xf32>
    tpu.vector_store %arg2[%c0_23, %c0_24], %100 {strides = array<i32>} : memref<8x128xf32, #tpu.memory_space<vmem>>, vector<8x128xf32>,
    %c0_25 = arith.constant 0 : index
    %c0_26 = arith.constant 0 : index
    %102 = vector.load %arg2[%c0_25, %c0_26] : memref<8x128xf32, #tpu.memory_space<vmem>>, vector<1x128xf32>
    tpu.vector_store %arg2[%c0_25, %c0_26], %99 {strides = array<i32>} : memref<8x128xf32, #tpu.memory_space<vmem>>, vector<1x128xf32>,
    %c1 = arith.constant 1 : index
    %c0_27 = arith.constant 0 : index
    %103 = vector.load %arg2[%c1, %c0_27] : memref<8x128xf32, #tpu.memory_space<vmem>>, vector<6x128xf32>
    tpu.vector_store %arg2[%c1, %c0_27], %85 {strides = array<i32>} : memref<8x128xf32, #tpu.memory_space<vmem>>, vector<6x128xf32>,
    return
  }
}

</mosaic_0001>

<bundles_post_ra>
// kernel: tpu_custom_call.1
= control target key start
LH: loop header
LB: loop body
LE: loop exit
PB: predicated region body
PF: predicated region fallthrough
CT: control target
= control target key end

     0   :  { %7 = vsyncpa [#allocation3], 0  ;;  %s484_s0 = inlined_call_operand.hbm [shape: f32[8,32], index: 0, kind: input, shape index: {}]   ;;  %s485_s1 = inlined_call_operand.vmem [shape: s32[1,8], index: 1, kind: input, shape index: {}]   ;;  %s486_s2 = inlined_call_operand.hbm [shape: f32[8,128], index: 2, kind: output, shape index: {}]  }
   0x1   :  { %8 = vsyncpa [#allocation4], 0  ;;  %s401_s9 = smov [#allocation2]   ;;  %s353_s13 = scalar_lea.hbm %s484_s0, 128 }
   0x2   :  { %s15_s10 = sshll.u32 %s401_s9, 4  ;;  %p354_p0 = scmp.ne.s32.totalorder %s484_s0, %s353_s13  ;;  %s16_s10 = int_to_ptr.vmem [resolvable:$true] %s15_s10 }
   0x3   :  { %p357_p1 = scmp.lt.u32.totalorder %s353_s13, %s484_s0 }
   0x5   :  { %p359_p2 = pnand %p357_p1, %p354_p0 }
   0x7   :  { %362 = shalt.err (!%p359_p2)
}
   0x8   :  { %s363_s18 = scalar_lea.vmem %s16_s10, 128  ;;  %p368_p4 = scmp.lt.s32.totalorder %s16_s10, %s16_s10 }
   0x9   :  { %p364_p3 = scmp.ne.s32.totalorder %s16_s10, %s363_s18  ;;  %p369_p5 = scmp.lt.s32.totalorder %s363_s18, %s363_s18 }
   0xb   :  { %p370_p6 = por %p369_p5, %p368_p4 }
   0xd   :  { %p371_p7 = pnand %p370_p6, %p364_p3 }
   0xf   :  { %374 = shalt.err (!%p371_p7)
}
  0x10   :  { %18 = dma.hbm_to_vmem [thread:$0]  %s484_s0, 128, %s16_s10, [#allocation3]  }
  0x11   :  { %397 = dma.done.wait [#allocation3], 128  }
  0x12   :  { %398 = vsyncadd [#allocation3], 4294967168  ;;  %v50_v0 = vld [vmem:[#allocation2] sm:$0xff]  ;;  %vm52_vm0 = vcmask 261120   ;;  %v402_v3 = vmov 0.0   ;;  %vm403_vm1 = vmmov 0   ;;  %v26_v4 = vlaneseq }
  0x13   :  { %v51_v1 = vmul.f32 %v50_v0, %v50_v0  ;;  %315 = vmatprep.subr.bf16.mxu0 %v402_v3  ;;  %284 = vst [vmem:[#allocation5] sm:$0xff] %v402_v3  ;;  %321 = vmatprep.subr.bf16.mxu1 %v402_v3  ;;  %v302_v5 = vld [vmem:[%s485_s1] ss:$0 sm:$0xff]  ;;  %vm36_vm2 = vcmask 64512   ;;  %vm174_vm6 = vcmask 1043456   ;;  %vm266_vm8 = vcmask 62464  }
  0x14   :  { %317 = vmatprep.mubr.msk.bf16.mxu0 %vm403_vm1, %v402_v3  ;;  %323 = vmatprep.mubr.msk.bf16.mxu1 %vm403_vm1, %v402_v3  ;;  %v27_v6 = vshrl.u32 %v26_v4, 7  ;;  %v443_v7 = vand.u32 127, %v26_v4  ;;  %s404_s25 = smov [#allocation5]  }
  0x15   :  { %v53_v2 = vsel %vm52_vm0, %v51_v1, 0.0  ;;  %s293_s26 = sshll.u32 %s404_s25, 4  ;;  %s294_s26 = int_to_ptr.vmem [resolvable:$true] %s293_s26 }
  0x16   :  { %54 = vadd.xlane.f32.xlu0 %v53_v2  ;;  %vm30_vm3 = vcmp.eq.s32.totalorder %v27_v6, %v443_v7  ;;  %vm163_vm7 = vcmp.eq.s32.totalorder %v302_v5, %v27_v6  ;;  %vm279_vm10 = vcmp.eq.s32.totalorder %v443_v7, 0  ;;  %vm281_vm11 = vcmp.eq.s32.totalorder %v443_v7, 1  ;;  %s375_s27 = scalar_lea.vmem %s294_s26, 128  ;;  %p380_p9 = scmp.lt.s32.totalorder %s294_s26, %s294_s26 }
  0x17   :  { %v35_v8 = vsel %vm30_vm3, %v302_v5, 0  ;;  %v305_v43 = vsel %vm163_vm7, 1.0, %v402_v3  ;;  %p376_p8 = scmp.ne.s32.totalorder %s294_s26, %s375_s27  ;;  %p381_p10 = scmp.lt.s32.totalorder %s375_s27, %s375_s27 }
  0x18   :  { %v37_v9 = vsel %vm36_vm2, %v35_v8, 0  ;;  %v267_v45 = vsel %vm266_vm8, %v305_v43, 0.0 }
  0x19   :  { %v39_v10 = vshrl.u32 %v37_v9, 16  ;;  %v38_v11 = vand.u32 65535, %v37_v9  ;;  %p382_p11 = por %p381_p10, %p380_p9 }
  0x1b   :  { %v41_v12 = vcvt.s32.f32 %v39_v10  ;;  %v40_v13 = vcvt.s32.f32 %v38_v11  ;;  %p383_p12 = pnand %p382_p11, %p376_p8 }
  0x1d   :  { %44 = vadd.xlane.f32.xlu0 %v41_v12  ;;  %42 = vadd.xlane.f32.xlu1 %v40_v13 }
  0xa3   :  { %v55_v14 = vpop.xlane.xlu0 %54 }
  0xa4   :  { %345 = vrsqrt.f32 %v55_v14 }
  0xaa   :  { %v45_v19 = vpop.xlane.xlu0 %44  ;;  %v43_v20 = vpop.xlane.xlu1 %42 }
  0xab   :  { %v47_v21 = vcvt.f32.s32 %v45_v19  ;;  %v46_v22 = vcvt.f32.s32 %v43_v20 }
  0xad   :  { %v48_v23 = vshll.u32 %v47_v21, 16 }
  0xae   :  { %v346_v15 = vpop.eup %345 }
  0xaf   :  { %v57_v16 = vmul.f32 %v346_v15, %v50_v0  ;;  %v49_v24 = vadd.s32 %v48_v23, %v46_v22 }
  0xb1   :  { %v58_v17 = vpack.c.bf16 %v57_v16, %v57_v16  ;;  %vm103_vm4 = vcmp.ne.s32.totalorder %v302_v5, %v49_v24  ;;  %vm166_vm5 = vcmp.eq.s32.totalorder %v49_v24, %v443_v7 }
  0xb2   :  { %v304_v25 = vsel %vm103_vm4, 1.0, %v402_v3  ;;  %v454_v29 = vsel %vm166_vm5, 1.0, %v402_v3 }
  0xb3   :  { %v60_v18 = vsel %vm52_vm0, %v58_v17, 0  ;;  %v106_v26 = vsub.f32 1.0, %v304_v25  ;;  %v148_v28 = vsel %vm36_vm2, %v304_v25, 0.0  ;;  %v170_v30 = vpack.c.bf16 %v454_v29, %v454_v29 }
  0xb4   :  { %316 = vmatpush3.bf16.xpose.msra.mxu0 %v60_v18 }
  0xb5   :  { %v119_v27 = vsel %vm36_vm2, %v106_v26, 0.0  ;;  %v176_v31 = vsel %vm174_vm6, %v170_v30, 0 }
  0xb6   :  { %120 = vadd.xlane.f32.xlu0 %v119_v27  ;;  %322 = vmatpush3.bf16.msra.mxu1 %v176_v31 }
  0xb7   :  { %327 = vmatprep.subr.bf16.mxu1 %v402_v3 }
  0xba   :  { %149 = vadd.xlane.f32.xlu0 %v148_v28 }
  0xbb   :  { %318 = vmatmul.mubr.msk.bf16.vlgmr.msra.gmra.mrb[0].mxu0 %vm52_vm0, %v58_v17  ;;  %v218_v17 = vpack.c.bf16 %v305_v43, %v305_v43 }
 0x143   :  { %v121_v46 = vpop.xlane.xlu0 %120 }
 0x144   :  { %v122_v47 = vrot.slane %v121_v46, 4 }
 0x146   :  { %v123_v49 = vadd.f32 %v122_v47, %v121_v46 }
 0x147   :  { %v150_v48 = vpop.xlane.xlu0 %149 }
 0x148   :  { %v151_v50 = vrot.slane %v150_v48, 4  ;;  %v124_v51 = vrot.slane %v123_v49, 2 }
 0x14a   :  { %v152_v52 = vadd.f32 %v151_v50, %v150_v48  ;;  %v125_v58 = vadd.f32 %v124_v51, %v123_v49 }
 0x14c   :  { %v153_v56 = vrot.slane %v152_v52, 2  ;;  %v126_v0 = vrot.slane %v125_v58, 1 }
 0x14e   :  { %v154_v63 = vadd.f32 %v153_v56, %v152_v52  ;;  %v127_v5 = vadd.f32 %v126_v0, %v125_v58 }
 0x150   :  { %v155_v6 = vrot.slane %v154_v63, 1 }
 0x152   :  { %v156_v10 = vadd.f32 %v155_v6, %v154_v63 }
 0x18e   :  { %v96_v32 = vpop.f32.mrb[0].mxu0 }
 0x18f   :  { %v102_v33 = vsub.f32 1.0, %v96_v32  ;;  %v319_v34 = vpop.f32.mrb[1].mxu0  ;;  %v270_v32 = vrot.slane %v454_v29, 4 }
 0x190   :  { %v99_v35 = vpop.f32.mrb[2].mxu0 }
 0x191   :  { %v169_v36 = vpack.c.bf16 %v102_v33, %v102_v33  ;;  %v320_v37 = vpop.f32.mrb[3].mxu0  ;;  %v107_v38 = vmul.f32 %v106_v26, %v102_v33  ;;  %v134_v39 = vsub.f32 1.0, %v102_v33  ;;  %v271_v33 = vadd.f32 %v454_v29, %v270_v32 }
 0x193   :  { %324 = vmatmul.mubr.msk.bf16.vlgmr.msra.gmra.mrb[0].mxu1 %vm36_vm2, %v169_v36  ;;  %v108_v40 = vsel %vm36_vm2, %v107_v38, 0.0  ;;  %v135_v41 = vmax.f32 %v134_v39, 0.0  ;;  %v272_v34 = vrot.slane %v271_v33, 2 }
 0x194   :  { %109 = vadd.xlane.f32.xlu1 %v108_v40  ;;  %329 = vmatprep.mubr.msk.bf16.mxu1 %vm403_vm1, %v402_v3 }
 0x195   :  { %v136_v42 = vmul.f32 %v304_v25, %v135_v41  ;;  %v273_v35 = vadd.f32 %v272_v34, %v271_v33 }
 0x197   :  { %v137_v44 = vsel %vm36_vm2, %v136_v42, 0.0  ;;  %v274_v36 = vrot.slane %v273_v35, 1 }
 0x198   :  { %138 = vadd.xlane.f32.xlu1 %v137_v44 }
 0x199   :  { %v275_v38 = vadd.f32 %v274_v36, %v273_v35 }
 0x19c   :  { %268 = vadd.xlane.f32.xlu1 %v267_v45 }
 0x221   :  { %v110_v53 = vpop.xlane.xlu1 %109 }
 0x222   :  { %v111_v54 = vrot.slane %v110_v53, 4 }
 0x224   :  { %v112_v55 = vadd.f32 %v111_v54, %v110_v53 }
 0x225   :  { %v139_v57 = vpop.xlane.xlu1 %138 }
 0x226   :  { %v113_v59 = vrot.slane %v112_v55, 2  ;;  %v140_v60 = vrot.slane %v139_v57, 4 }
 0x228   :  { %v141_v61 = vadd.f32 %v140_v60, %v139_v57  ;;  %v114_v62 = vadd.f32 %v113_v59, %v112_v55 }
 0x229   :  { %v269_v37 = vpop.xlane.xlu1 %268 }
 0x22a   :  { %v142_v1 = vrot.slane %v141_v61, 2  ;;  %v115_v2 = vrot.slane %v114_v62, 1  ;;  %v276_v39 = vmul.f32 %v275_v38, %v269_v37 }
 0x22c   :  { %v116_v3 = vadd.f32 %v115_v2, %v114_v62  ;;  %v143_v4 = vadd.f32 %v142_v1, %v141_v61 }
 0x22e   :  { %333 = vpush %v116_v3  ;;  %v144_v8 = vrot.slane %v143_v4, 1 }
 0x22f   :  { %335 = vpush %v127_v5 }
 0x230   :  { %v145_v9 = vadd.f32 %v144_v8, %v143_v4 }
 0x232   :  { %337 = vpush %v145_v9 }
 0x233   :  { %339 = vpush %v156_v10 }
 0x25f   :  { %s334_s1 = spop %333 }
 0x260   :  { %s336_s22 = spop %335  ;;  %v118_v21 = vstv %s334_s1 }
 0x261   :  { %v129_v11 = vstv %s336_s22 }
 0x262   :  { %347 = vrcp.f32 %v129_v11  ;;  %vm130_vm9 = vcmp.ne.f32.partialorder %v129_v11, 0.0 }
 0x263   :  { %s338_s23 = spop %337 }
 0x264   :  { %s340_s24 = spop %339  ;;  %v147_v24 = vstv %s338_s23 }
 0x265   :  { %v158_v12 = vstv %s340_s24 }
 0x266   :  { %349 = vrcp.f32 %v158_v12  ;;  %v212_v13 = vpop.f32.mrb[0].mxu1  ;;  %vm159_vm12 = vcmp.ne.f32.partialorder %v158_v12, 0.0 }
 0x267   :  { %v219_v14 = vpack.c.bf16 %v212_v13, %v212_v13  ;;  %v325_v15 = vpop.f32.mrb[1].mxu1  ;;  %351 = vrcp.f32 %v276_v39 }
 0x268   :  { %v215_v16 = vpop.f32.mrb[2].mxu1 }
 0x269   :  { %v224_v18 = vsel %vm174_vm6, %v219_v14, 0  ;;  %v326_v19 = vpop.f32.mrb[3].mxu1 }
 0x26a   :  { %328 = vmatpush3.bf16.msra.mxu1 %v224_v18 }
 0x26c   :  { %v348_v20 = vpop.eup %347 }
 0x26d   :  { %v132_v22 = vmul.f32 %v348_v20, %v118_v21  ;;  %330 = vmatmul.mubr.msk.bf16.vlgmr.msra.gmra.mrb[4].mxu1 %vm36_vm2, %v218_v17 }
 0x26f   :  { %v133_v25 = vsel %vm130_vm9, %v132_v22, %v118_v21 }
 0x270   :  { %v350_v23 = vpop.eup %349  ;;  %v280_v28 = vsel %vm279_vm10, %v133_v25, 0.0 }
 0x271   :  { %v161_v26 = vmul.f32 %v350_v23, %v147_v24  ;;  %v352_v7 = vpop.eup %351 }
 0x273   :  { %v162_v27 = vsel %vm159_vm12, %v161_v26, %v147_v24 }
 0x274   :  { %v282_v30 = vsel %vm281_vm11, %v162_v27, 0.0 }
 0x275   :  { %v283_v31 = vadd.f32 %v282_v30, %v280_v28 }
 0x277   :  { %285 = vst [vmem:[#allocation5] sm:$0x1] %v283_v31 }
 0x340   :  { %v260_v40 = vpop.f32.mrb[4].mxu1 }
 0x341   :  { %v278_v41 = vmul.f32 %v352_v7, %v260_v40  ;;  %v331_v42 = vpop.f32.mrb[5].mxu1 }
 0x342   :  { %v263_v43 = vpop.f32.mrb[6].mxu1 }
 0x343   :  { %286 = vst [vmem:[#allocation5 + $0x1] sm:$0x3f] %v278_v41  ;;  %v332_v44 = vpop.f32.mrb[7].mxu1 }
 0x344   :  { %386 = shalt.err (!%p383_p12)
}
 0x345   :  { %s387_s30 = scalar_lea.hbm %s486_s2, 128 }
 0x346   :  { %p388_p13 = scmp.ne.s32.totalorder %s486_s2, %s387_s30  ;;  %p391_p0 = scmp.lt.u32.totalorder %s387_s30, %s486_s2 }
 0x348   :  { %p393_p1 = pnand %p391_p0, %p388_p13 }
 0x34a   :  { %396 = shalt.err (!%p393_p1)
}
 0x34b   :  { %296 = dma.vmem_to_hbm [thread:$0]  %s294_s26, 128, %s486_s2, [#allocation4]  }
 0x34c   :  { %399 = dma.done.wait [#allocation4], 128  }
 0x34d   :  { %400 = vsyncadd [#allocation4], 4294967168 }
 0x34e   :  { %300 = vsyncpa [#allocation3], 1 }
 0x34f   :  { %301 = vsyncpa [#allocation4], 1 }

</bundles_post_ra>
